<compile_context>
chip_gen: v6e
topology: v6e:2x2x1
jax: 0.10.0
libtpu: 0.0.40
codegen_flags: <defaults>
</compile_context>

<pallas_src>
import functools

import numpy as np
import jax
import jax.numpy as jnp
from jax.experimental import pallas as pl
from jax.experimental.pallas import tpu as pltpu


def _round_up(x, m):
    return ((x + m - 1) // m) * m


def _cdiv(a, b):
    return -(-a // b)


# ----------------------------------------------------------------------------
# Fused Pallas kernel: BCE(sigmoid) sum  +  SmoothL1 (elementwise + sum)
# ----------------------------------------------------------------------------
def _setcrit_fused_kernel(norm_ref,            # (2,)   f32 SMEM: [1/num_boxes, 1/num_reg_boxes]
                          logits_ref,          # (TR,128) f32 dense logits tile
                          tgt_ref,             # (TR,128) f32 dense one-hot target tile
                          wdiff_ref,           # (RB,128) f32 resident box-diff slab
                          sums_ref,            # (1,2)  f32 SMEM out: [loss_ce, loss_bbox]
                          elem_ref,            # (RB,128) f32 out: per-element SmoothL1 / num_reg
                          acc_ref,             # (TR,128) f32 VMEM vector accumulator
                          *, sigma):
    i = pl.program_id(0)

    # -- step 0: init CE accumulator + box-regression loss (resident block) ---
    @pl.when(i == 0)
    def _init_and_bbox():
        acc_ref[...] = jnp.zeros_like(acc_ref)
        inv_reg = norm_ref[1]                           # runtime scalar from SMEM
        d = wdiff_ref[...]                              # zero padded -> SmoothL1(0)=0
        sigma2 = sigma * sigma
        abs_d = jnp.abs(d)
        loss = jnp.where(abs_d < 1.0 / sigma2,
                         0.5 * sigma2 * d * d,          # 0.5 * (sigma * x)^2
                         abs_d - 0.5 / sigma2)
        loss = loss * inv_reg                           # fold 1/num_reg_boxes
        elem_ref[...] = loss                            # lane-dense, unmasked store
        sums_ref[0, 1] = jnp.sum(loss)

    # -- every step: BCE on this fully dense (TR,128) tile ---------------------
    # Exact torch semantics: p = sigmoid(x); loss = -(t*log(p) + (1-t)*log(1-p))
    # with both logs clamped at -100 (nn.BCELoss).  Lane padding uses x = -100
    # with t = 0, which contributes exactly 0, so no mask is needed.
    x = logits_ref[...]
    t = tgt_ref[...]
    p = 1.0 / (1.0 + jnp.exp(-x))
    log_p = jnp.maximum(jnp.log(p), -100.0)
    log_q = jnp.maximum(jnp.log(1.0 - p), -100.0)
    bce = -(t * log_p + (1.0 - t) * log_q)
    acc_ref[...] += bce                                 # pure VALU vreg adds

    # -- last step: one XLU reduce + normalize + publish -----------------------
    @pl.when(i == pl.num_programs(0) - 1)
    def _finalize():
        sums_ref[0, 0] = jnp.sum(acc_ref[...]) * norm_ref[0]


def setcrit_losses_pallas(pred_logits, gt_classes, weighted_diff, *,
                          num_boxes, num_reg_boxes, sigma,
                          max_reg_boxes=None, tile_rows=256):
    """Returns (loss_ce, loss_bbox, loc_loss_elem) — already normalized.

    Kernel shapes depend only on (B, Q, C), `max_reg_boxes` and `tile_rows`
    (all static per model config), never on the number of matches, so the
    Mosaic kernel compiles once per run.
    """
    b, q, c = pred_logits.shape
    m = b * q
    n, code = weighted_diff.shape

    # ---- classification slab: fully dense (rows, 128) packing ---------------
    ltot = m * c
    r_needed = max(_cdiv(ltot, 128), 1)
    tr_max = _round_up(min(int(tile_rows), _round_up(r_needed, 8)), 8)
    grid = _cdiv(r_needed, tr_max)
    tr = _round_up(_cdiv(r_needed, grid), 8)            # avoid a whole extra tile of pad
    r_pad = grid * tr

    logits_slab = jnp.pad(
        pred_logits.astype(jnp.float32).reshape(-1),
        (0, r_pad * 128 - ltot), constant_values=-100.0).reshape(r_pad, 128)
    cls_idx = jnp.arange(1, c + 1, dtype=jnp.int32)
    # one-hot over foreground classes (== label_to_one_hot(...)[..., 1:])
    tgt_slab = jnp.pad(
        (gt_classes.reshape(m, 1).astype(jnp.int32) == cls_idx[None, :]
         ).astype(jnp.float32).reshape(-1),
        (0, r_pad * 128 - ltot)).reshape(r_pad, 128)

    # ---- box slab: static max box count (no per-match-count recompiles) -----
    if max_reg_boxes is None:
        max_reg_boxes = m                                # reg matches index into (B, Q)
    max_reg_boxes = max(int(max_reg_boxes), int(n), 1)
    k_max = max_reg_boxes * code
    rows_b = _round_up(max(_cdiv(k_max, 128), 1), 8)
    k = n * code
    wflat = jnp.pad(weighted_diff.astype(jnp.float32).reshape(-1),
                    (0, rows_b * 128 - k)).reshape(rows_b, 128)

    # ---- runtime normalizers as SMEM scalars (not compile-time constants) ---
    inv_nb = 1.0 / jnp.maximum(jnp.asarray(num_boxes, jnp.float32), 1.0)
    inv_nrb = 1.0 / jnp.maximum(jnp.asarray(num_reg_boxes, jnp.float32), 1.0)
    norms = jnp.stack([inv_nb, inv_nrb])

    kernel = functools.partial(_setcrit_fused_kernel, sigma=float(sigma))

    sums, elem_pk = pl.pallas_call(
        kernel,
        out_shape=(jax.ShapeDtypeStruct((1, 2), jnp.float32),          # [ce, bbox]
                   jax.ShapeDtypeStruct((rows_b, 128), jnp.float32)),  # packed elem
        grid_spec=pltpu.PrefetchScalarGridSpec(
            num_scalar_prefetch=0,
            grid=(grid,),
            in_specs=[
                pl.BlockSpec(memory_space=pltpu.MemorySpace.SMEM),     # norms (2,)
                pl.BlockSpec((tr, 128), lambda i: (i, 0)),             # logits tile
                pl.BlockSpec((tr, 128), lambda i: (i, 0)),             # target tile
                pl.BlockSpec((rows_b, 128), lambda i: (0, 0)),         # resident wdiff
            ],
            out_specs=(
                pl.BlockSpec(memory_space=pltpu.MemorySpace.SMEM),     # sums (1,2)
                pl.BlockSpec((rows_b, 128), lambda i: (0, 0)),         # resident elem
            ),
            scratch_shapes=[pltpu.VMEM((tr, 128), jnp.float32)]),      # CE accumulator
        compiler_params=pltpu.CompilerParams(
            # Single scalar-sum reduction axis => "arbitrary".
            dimension_semantics=("arbitrary",)),
    )(norms, logits_slab, tgt_slab, wflat)

    loss_ce = sums[0, 0]
    loss_bbox = sums[0, 1]
    loc_loss_elem = elem_pk.reshape(-1)[:k].reshape(n, code)
    return loss_ce, loss_bbox, loc_loss_elem


# ----------------------------------------------------------------------------
# Plain-JAX glue (per-box geometry / encoding from _get_gt_of_rois)
# ----------------------------------------------------------------------------
def rotate_points_along_z(points, angle):
    # points: (N, 1, C>=3), angle: (N,) — rotates xy, passes extra dims through.
    cosa, sina = jnp.cos(angle), jnp.sin(angle)
    zeros, ones = jnp.zeros_like(angle), jnp.ones_like(angle)
    rot = jnp.stack(
        [cosa, sina, zeros, -sina, cosa, zeros, zeros, zeros, ones], axis=1
    ).reshape(-1, 3, 3)
    xyz = jnp.matmul(points[:, :, 0:3], rot)
    return jnp.concatenate([xyz, points[:, :, 3:]], axis=-1)


def residual_encode(boxes, anchors):
    # ResidualCoder.encode_torch with encode_angle_by_sincos=False, code_size=7.
    anchors = anchors.at[:, 3:6].set(jnp.maximum(anchors[:, 3:6], 1e-5))
    boxes = boxes.at[:, 3:6].set(jnp.maximum(boxes[:, 3:6], 1e-5))
    xa, ya, za, dxa, dya, dza, ra = [anchors[:, i] for i in range(7)]
    xg, yg, zg, dxg, dyg, dzg, rg = [boxes[:, i] for i in range(7)]
    diag = jnp.sqrt(dxa ** 2 + dya ** 2)
    xt, yt, zt = (xg - xa) / diag, (yg - ya) / diag, (zg - za) / dza
    dxt, dyt, dzt = jnp.log(dxg / dxa), jnp.log(dyg / dya), jnp.log(dzg / dza)
    rt = rg - ra
    return jnp.stack([xt, yt, zt, dxt, dyt, dzt, rt], axis=-1)


def get_gt_of_rois(gt_boxes, rois):
    roi_center = rois[:, 0:3]
    roi_ry = rois[:, 6] % (2.0 * np.pi)
    gt = gt_boxes.at[:, 0:3].set(gt_boxes[:, 0:3] - roi_center)
    n, c = gt.shape
    gt = rotate_points_along_z(gt.reshape(n, 1, c), -roi_ry).reshape(n, c)
    # encode_angle_by_sincos = False branch
    heading = (gt[:, 6] - roi_ry) % (2.0 * np.pi)
    opposite = (heading > np.pi * 0.5) & (heading < np.pi * 1.5)
    heading = jnp.where(opposite, (heading + np.pi) % (2.0 * np.pi), heading)
    heading = jnp.where(heading > np.pi, heading - 2.0 * np.pi, heading)
    heading = jnp.clip(heading, -np.pi / 2.0, np.pi / 2.0)
    gt = gt.at[:, 6].set(heading)
    rois_anchor = rois.at[:, 0:3].set(0.0)
    rois_anchor = rois_anchor.at[:, 6].set(0.0)
    return residual_encode(gt, rois_anchor)


# ----------------------------------------------------------------------------
# SetCritROI
# ----------------------------------------------------------------------------
class SetCritROIPallas:
    def __init__(self, weight_dict, losses, sigma, code_weights,
                 gamma=2.0, alpha=0.25, use_focal_loss=False):
        self.weight_dict = weight_dict
        self.losses = losses
        self.sigma = float(sigma)
        self.code_weights = jnp.asarray(code_weights, jnp.float32)  # registered buffer
        if use_focal_loss:
            # TODO(synk): E2ESigmoidFocalClassificationLoss branch not implemented;
            # guard it so raw logits never reach the BCE path.
            raise NotImplementedError("use_focal_loss=True path not implemented")
        self.use_focal_loss = use_focal_loss

    def forward(self, pred_dicts, gt_dicts, indices, reg_indices, cur_epoch=0):
        # `indices` / `reg_indices` replace self.matcher(pred_dicts, gt_dicts) output.
        # TODO(synk): Hungarian matcher is an external module; matches are static inputs here.
        batch_idx = np.concatenate([np.full_like(src, i) for i, (src, _) in enumerate(indices)])
        src_idx = np.concatenate([src for src, _ in indices])
        rbatch_idx = np.concatenate([np.full_like(src, i) for i, (src, _) in enumerate(reg_indices)])
        rsrc_idx = np.concatenate([src for src, _ in reg_indices])

        pred_logits = pred_dicts['pred_logits']
        b, q, _ = pred_logits.shape
        flat = batch_idx.astype(np.int64) * q + src_idx.astype(np.int64)
        assert len(np.unique(flat)) == len(flat), "duplicate matcher indices (scatter would be last-write)"

        rois = pred_dicts['rois'][rbatch_idx, rsrc_idx]
        rcnn_regs = pred_dicts['rcnn_regs'][rbatch_idx, rsrc_idx]
        gt_boxes = jnp.concatenate(
            [jnp.asarray(gb)[tgt] for gb, (_, tgt) in zip(gt_dicts['gt_boxes'], reg_indices)], axis=0)
        gt_of_rois = get_gt_of_rois(gt_boxes, rois)

        gt_classes_pos = jnp.concatenate(
            [jnp.asarray(gc)[tgt] for gc, (_, tgt) in zip(gt_dicts['gt_classes'], indices)]) + 1
        gt_classes = jnp.zeros((b, q), jnp.int32)
        gt_classes = gt_classes.at[batch_idx, src_idx].set(gt_classes_pos.astype(jnp.int32))

        # TODO(synk): torch.distributed.all_reduce of num_boxes skipped (world_size == 1).
        num_boxes = max(float(batch_idx.shape[0]), 1.0)
        num_reg_boxes = max(float(rcnn_regs.shape[0]), 1.0)

        # TODO(synk): code_weights applied to the per-code diff (WeightedSmoothL1
        # semantics); identical to the unweighted reference when all weights == 1.
        weighted_diff = (gt_of_rois - rcnn_regs) * self.code_weights[None, :]

        losses = {}
        need_ce = 'loss_ce' in self.losses
        need_bbox = 'loss_bbox' in self.losses
        if need_ce or need_bbox:
            loss_ce, loss_bbox, loc_elem = setcrit_losses_pallas(
                pred_logits, gt_classes, weighted_diff,
                num_boxes=num_boxes, num_reg_boxes=num_reg_boxes,
                sigma=self.sigma, max_reg_boxes=b * q)
            if need_ce:
                losses['loss_ce'] = loss_ce
            if need_bbox:
                losses['loss_bbox'] = loss_bbox
                losses['loc_loss_elem'] = loc_elem
        # TODO(synk): loss_iou (IOU3DLoss: rotated 3D box IoU via polygon clipping) has
        # no clean Pallas equivalent and is omitted from self.losses.

        total = sum(losses[k] * self.weight_dict[k] for k in losses if k in self.weight_dict)
        losses['loss'] = total
        return losses


# ----------------------------------------------------------------------------
# Demo
# ----------------------------------------------------------------------------
if __name__ == "__main__":
    key = jax.random.PRNGKey(0)
    B, Q, C, CODE, G = 2, 8, 3, 7, 3
    k1, k2, k3, k4, k5 = jax.random.split(key, 5)

    pred_logits = jax.random.normal(k1, (B, Q, C), jnp.float32)
    # Exercise the torch nn.BCELoss per-element log clamp (-100) on saturated logits.
    pred_logits = pred_logits.at[0, 0, 1].set(120.0)    # confident wrong negative -> loss 100
    pred_logits = pred_logits.at[1, 1, 1].set(-120.0)   # confident wrong positive -> loss 100

    rois = jnp.concatenate([
        jax.random.normal(k2, (B, Q, 3), jnp.float32) * 5.0,               # centers
        jax.random.uniform(k3, (B, Q, 3), jnp.float32, 1.0, 4.0),          # sizes
        jax.random.uniform(k4, (B, Q, 1), jnp.float32, -np.pi, np.pi),     # yaw
    ], axis=-1)
    rcnn_regs = jax.random.normal(k5, (B, Q, CODE), jnp.float32) * 0.1

    kg1, kg2, kg3 = jax.random.split(jax.random.fold_in(key, 7), 3)
    gt_boxes = jnp.concatenate([
        jax.random.normal(kg1, (B, G, 3), jnp.float32) * 5.0,
        jax.random.uniform(kg2, (B, G, 3), jnp.float32, 1.0, 4.0),
        jax.random.uniform(kg3, (B, G, 1), jnp.float32, -np.pi, np.pi),
    ], axis=-1)
    gt_classes = jnp.array([[0, 1, 2], [2, 0, 1]], jnp.int32)

    pred_dicts = {'pred_logits': pred_logits, 'rois': rois, 'rcnn_regs': rcnn_regs}
    gt_dicts = {'gt_boxes': [gt_boxes[0], gt_boxes[1]],
                'gt_classes': [gt_classes[0], gt_classes[1]]}

    # Deterministic "matcher" output: (pred_query_indices, gt_indices) per batch element.
    indices = [(np.array([0, 2, 5]), np.array([0, 1, 2])),
               (np.array([1, 4]), np.array([2, 0]))]
    reg_indices = indices

    crit = SetCritROIPallas(
        weight_dict={'loss_ce': 1.0, 'loss_bbox': 2.0},
        losses=['loss_ce', 'loss_bbox'],
        sigma=3.0,
        code_weights=[1.0] * CODE,
        use_focal_loss=False,
    )

    out = crit.forward(pred_dicts, gt_dicts, indices, reg_indices, cur_epoch=0)
    jax.block_until_ready(out['loss'])
    jax.block_until_ready(out['loc_loss_elem'])

    # ---- pure-JAX reference check (mirrors the PyTorch module semantics) ----
    b_idx = np.concatenate([np.full_like(s, i) for i, (s, _) in enumerate(indices)])
    s_idx = np.concatenate([s for s, _ in indices])
    num_boxes = max(float(len(s_idx)), 1.0)

    gt_cls_full = jnp.zeros((B, Q), jnp.int32).at[b_idx, s_idx].set(
        jnp.concatenate([gt_dicts['gt_classes'][i][t]
                         for i, (_, t) in enumerate(indices)]) + 1)
    probs = 1.0 / (1.0 + jnp.exp(-pred_logits))
    one_hot = (gt_cls_full[..., None] == jnp.arange(1, C + 1)).astype(jnp.float32)
    log_p = jnp.maximum(jnp.log(probs), -100.0)
    log_1mp = jnp.maximum(jnp.log(1.0 - probs), -100.0)
    ref_ce = jnp.sum(-(one_hot * log_p + (1.0 - one_hot) * log_1mp)) / num_boxes

    rois_m = rois[b_idx, s_idx]
    regs_m = rcnn_regs[b_idx, s_idx]
    gts_m = jnp.concatenate([gt_dicts['gt_boxes'][i][t]
                             for i, (_, t) in enumerate(reg_indices)], axis=0)
    d = get_gt_of_rois(gts_m, rois_m) - regs_m            # code_weights == 1
    s2 = 3.0 ** 2
    sl1 = jnp.where(jnp.abs(d) < 1.0 / s2, 0.5 * s2 * d * d, jnp.abs(d) - 0.5 / s2)
    num_reg = max(float(regs_m.shape[0]), 1.0)
    ref_bbox = jnp.sum(sl1) / num_reg
    ref_elem = sl1 / num_reg

    np.testing.assert_allclose(np.asarray(out['loss_ce']), np.asarray(ref_ce),
                               rtol=1e-4, atol=1e-5)
    np.testing.assert_allclose(np.asarray(out['loss_bbox']), np.asarray(ref_bbox),
                               rtol=1e-4, atol=1e-5)
    np.testing.assert_allclose(np.asarray(out['loc_loss_elem']), np.asarray(ref_elem),
                               rtol=1e-4, atol=1e-5)
    assert np.isfinite(float(out['loss']))
    print("KERNEL_OK")
</pallas_src>

<mosaic_0001>
module attributes {stable_mosaic.version = 11 : i64} {
  func.func @_setcrit_fused_kernel(%arg0: i32, %arg1: memref<2xf32, #tpu.memory_space<smem>>, %arg2: memref<8x128xf32, #tpu.memory_space<vmem>>, %arg3: memref<8x128xf32, #tpu.memory_space<vmem>>, %arg4: memref<8x128xf32, #tpu.memory_space<vmem>>, %arg5: memref<1x2xf32, #tpu.memory_space<smem>>, %arg6: memref<8x128xf32, #tpu.memory_space<vmem>>, %arg7: memref<8x128xf32, #tpu.memory_space<vmem>>) attributes {dimension_semantics = [#tpu.dimension_semantics<arbitrary>], iteration_bounds = array<i64: 1>, scalar_prefetch = 0 : i64, scratch_operands = 1 : i64, tpu.core_type = #tpu.core_type<tc>, window_params = [{transform_indices = @transform_0, window_bounds = array<i64: 2>}, {transform_indices = @transform_1, window_bounds = array<i64: 8, 128>}, {transform_indices = @transform_2, window_bounds = array<i64: 8, 128>}, {pipeline_mode = #tpu.pipeline_mode<synchronous>, transform_indices = @transform_3, window_bounds = array<i64: 8, 128>}, {transform_indices = @transform_4, window_bounds = array<i64: 1, 2>}, {pipeline_mode = #tpu.pipeline_mode<synchronous>, transform_indices = @transform_5, window_bounds = array<i64: 8, 128>}]} {
    %c0_i32 = arith.constant 0 : i32
    %0 = arith.cmpi eq, %arg0, %c0_i32 : i32
    %1 = arith.extui %0 : i1 to i32
    %c0_i32_0 = arith.constant 0 : i32
    %2 = arith.cmpi ne, %1, %c0_i32_0 : i32
    scf.if %2 {
      %cst_17 = arith.constant 0.000000e+00 : f32
      %33 = vector.broadcast %cst_17 : f32 to vector<8x128xf32>
      %c0_18 = arith.constant 0 : index
      %c0_19 = arith.constant 0 : index
      %34 = vector.load %arg7[%c0_18, %c0_19] : memref<8x128xf32, #tpu.memory_space<vmem>>, vector<8x128xf32>
      tpu.vector_store %arg7[%c0_18, %c0_19], %33 {strides = array<i32>} : memref<8x128xf32, #tpu.memory_space<vmem>>, vector<8x128xf32>,
      %c1 = arith.constant 1 : index
      %35 = memref.load %arg1[%c1] : memref<2xf32, #tpu.memory_space<smem>>
      %c0_20 = arith.constant 0 : index
      %c0_21 = arith.constant 0 : index
      %36 = vector.load %arg4[%c0_20, %c0_21] : memref<8x128xf32, #tpu.memory_space<vmem>>, vector<8x128xf32>
      %37 = math.absf %36 : vector<8x128xf32>
      %cst_22 = arith.constant 0.111111112 : f32
      %38 = vector.broadcast %cst_22 : f32 to vector<8x128xf32>
      %39 = arith.cmpf olt, %37, %38 : vector<8x128xf32>
      %cst_23 = arith.constant 4.500000e+00 : f32
      %40 = vector.broadcast %cst_23 : f32 to vector<8x128xf32>
      %41 = arith.mulf %40, %36 : vector<8x128xf32>
      %42 = arith.mulf %41, %36 : vector<8x128xf32>
      %cst_24 = arith.constant 0.055555556 : f32
      %43 = vector.broadcast %cst_24 : f32 to vector<8x128xf32>
      %44 = arith.subf %37, %43 : vector<8x128xf32>
      %45 = arith.select %39, %42, %44 : vector<8x128xi1>, vector<8x128xf32>
      %46 = vector.broadcast %35 : f32 to vector<8x128xf32>
      %47 = arith.mulf %45, %46 : vector<8x128xf32>
      %c0_25 = arith.constant 0 : index
      %c0_26 = arith.constant 0 : index
      %48 = vector.load %arg6[%c0_25, %c0_26] : memref<8x128xf32, #tpu.memory_space<vmem>>, vector<8x128xf32>
      tpu.vector_store %arg6[%c0_25, %c0_26], %47 {strides = array<i32>} : memref<8x128xf32, #tpu.memory_space<vmem>>, vector<8x128xf32>,
      %49 = vector.shape_cast %47 : vector<8x128xf32> to vector<1x8x128xf32>
      %cst_27 = arith.constant dense<0.000000e+00> : vector<1xf32>
      %50 = vector.multi_reduction <add>, %49, %cst_27 [1, 2] : vector<1x8x128xf32> to vector<1xf32>
      %51 = vector.shape_cast %50 : vector<1xf32> to vector<1x1x1xf32>
      %52 = vector.extract %51[0, 0, 0] : f32 from vector<1x1x1xf32>
      %c0_28 = arith.constant 0 : index
      %c1_29 = arith.constant 1 : index
      %53 = memref.load %arg5[%c0_28, %c1_29] : memref<1x2xf32, #tpu.memory_space<smem>>
      memref.store %52, %arg5[%c0_28, %c1_29] : memref<1x2xf32, #tpu.memory_space<smem>>
    } else {
    }
    %c0 = arith.constant 0 : index
    %c0_1 = arith.constant 0 : index
    %3 = vector.load %arg2[%c0, %c0_1] : memref<8x128xf32, #tpu.memory_space<vmem>>, vector<8x128xf32>
    %c0_2 = arith.constant 0 : index
    %c0_3 = arith.constant 0 : index
    %4 = vector.load %arg3[%c0_2, %c0_3] : memref<8x128xf32, #tpu.memory_space<vmem>>, vector<8x128xf32>
    %cst = arith.constant 0.000000e+00 : f32
    %5 = vector.broadcast %cst : f32 to vector<8x128xf32>
    %6 = arith.subf %5, %3 : vector<8x128xf32>
    %7 = math.exp %6 : vector<8x128xf32>
    %cst_4 = arith.constant 1.000000e+00 : f32
    %8 = vector.broadcast %cst_4 : f32 to vector<8x128xf32>
    %9 = arith.addf %8, %7 : vector<8x128xf32>
    %cst_5 = arith.constant 1.000000e+00 : f32
    %10 = vector.broadcast %cst_5 : f32 to vector<8x128xf32>
    %11 = arith.divf %10, %9 : vector<8x128xf32>
    %12 = math.log %11 : vector<8x128xf32>
    %cst_6 = arith.constant -1.000000e+02 : f32
    %13 = vector.broadcast %cst_6 : f32 to vector<8x128xf32>
    %14 = arith.maximumf %12, %13 : vector<8x128xf32>
    %cst_7 = arith.constant 1.000000e+00 : f32
    %15 = vector.broadcast %cst_7 : f32 to vector<8x128xf32>
    %16 = arith.subf %15, %11 : vector<8x128xf32>
    %17 = math.log %16 : vector<8x128xf32>
    %cst_8 = arith.constant -1.000000e+02 : f32
    %18 = vector.broadcast %cst_8 : f32 to vector<8x128xf32>
    %19 = arith.maximumf %17, %18 : vector<8x128xf32>
    %20 = arith.mulf %4, %14 : vector<8x128xf32>
    %cst_9 = arith.constant 1.000000e+00 : f32
    %21 = vector.broadcast %cst_9 : f32 to vector<8x128xf32>
    %22 = arith.subf %21, %4 : vector<8x128xf32>
    %23 = arith.mulf %22, %19 : vector<8x128xf32>
    %24 = arith.addf %20, %23 : vector<8x128xf32>
    %cst_10 = arith.constant 0.000000e+00 : f32
    %25 = vector.broadcast %cst_10 : f32 to vector<8x128xf32>
    %26 = arith.subf %25, %24 : vector<8x128xf32>
    %c0_11 = arith.constant 0 : index
    %c0_12 = arith.constant 0 : index
    %27 = vector.load %arg7[%c0_11, %c0_12] : memref<8x128xf32, #tpu.memory_space<vmem>>, vector<8x128xf32>
    %28 = arith.addf %27, %26 : vector<8x128xf32>
    %c0_13 = arith.constant 0 : index
    %c0_14 = arith.constant 0 : index
    %29 = vector.load %arg7[%c0_13, %c0_14] : memref<8x128xf32, #tpu.memory_space<vmem>>, vector<8x128xf32>
    tpu.vector_store %arg7[%c0_13, %c0_14], %28 {strides = array<i32>} : memref<8x128xf32, #tpu.memory_space<vmem>>, vector<8x128xf32>,
    %c0_i32_15 = arith.constant 0 : i32
    %30 = arith.cmpi eq, %arg0, %c0_i32_15 : i32
    %31 = arith.extui %30 : i1 to i32
    %c0_i32_16 = arith.constant 0 : i32
    %32 = arith.cmpi ne, %31, %c0_i32_16 : i32
    scf.if %32 {
      %c0_17 = arith.constant 0 : index
      %c0_18 = arith.constant 0 : index
      %33 = vector.load %arg7[%c0_17, %c0_18] : memref<8x128xf32, #tpu.memory_space<vmem>>, vector<8x128xf32>
      %34 = vector.shape_cast %33 : vector<8x128xf32> to vector<1x8x128xf32>
      %cst_19 = arith.constant dense<0.000000e+00> : vector<1xf32>
      %35 = vector.multi_reduction <add>, %34, %cst_19 [1, 2] : vector<1x8x128xf32> to vector<1xf32>
      %36 = vector.shape_cast %35 : vector<1xf32> to vector<1x1x1xf32>
      %37 = vector.extract %36[0, 0, 0] : f32 from vector<1x1x1xf32>
      %c0_20 = arith.constant 0 : index
      %38 = memref.load %arg1[%c0_20] : memref<2xf32, #tpu.memory_space<smem>>
      %39 = arith.mulf %37, %38 : f32
      %c0_21 = arith.constant 0 : index
      %c0_22 = arith.constant 0 : index
      %40 = memref.load %arg5[%c0_21, %c0_22] : memref<1x2xf32, #tpu.memory_space<smem>>
      memref.store %39, %arg5[%c0_21, %c0_22] : memref<1x2xf32, #tpu.memory_space<smem>>
    } else {
    }
    return
  }
  func.func @transform_0(%arg0: i32) -> i32 {
    %c0_i32 = arith.constant 0 : i32
    %c0_i32_0 = arith.constant 0 : i32
    return %c0_i32 : i32
  }
  func.func @transform_1(%arg0: i32) -> (i32, i32) {
    %c0_i32 = arith.constant 0 : i32
    %c0_i32_0 = arith.constant 0 : i32
    return %arg0, %c0_i32 : i32, i32
  }
  func.func @transform_2(%arg0: i32) -> (i32, i32) {
    %c0_i32 = arith.constant 0 : i32
    %c0_i32_0 = arith.constant 0 : i32
    return %arg0, %c0_i32 : i32, i32
  }
  func.func @transform_3(%arg0: i32) -> (i32, i32) {
    %c0_i32 = arith.constant 0 : i32
    %c0_i32_0 = arith.constant 0 : i32
    %c0_i32_1 = arith.constant 0 : i32
    return %c0_i32, %c0_i32_0 : i32, i32
  }
  func.func @transform_4(%arg0: i32) -> (i32, i32) {
    %c0_i32 = arith.constant 0 : i32
    %c0_i32_0 = arith.constant 0 : i32
    %c0_i32_1 = arith.constant 0 : i32
    return %c0_i32, %c0_i32_0 : i32, i32
  }
  func.func @transform_5(%arg0: i32) -> (i32, i32) {
    %c0_i32 = arith.constant 0 : i32
    %c0_i32_0 = arith.constant 0 : i32
    %c0_i32_1 = arith.constant 0 : i32
    return %c0_i32, %c0_i32_0 : i32, i32
  }
}

</mosaic_0001>

<bundles_post_ra>
// kernel: tpu_custom_call.1
= control target key start
LH: loop header
LB: loop body
LE: loop exit
PB: predicated region body
PF: predicated region fallthrough
CT: control target
= control target key end

     0   :  { %11 = vsyncpa [#allocation6], 0  ;;  %s344_s0 = inlined_call_operand.hbm [shape: f32[2], index: 0, kind: input, shape index: {}]   ;;  %s345_s1 = inlined_call_operand.hbm [shape: f32[8,128], index: 1, kind: input, shape index: {}]   ;;  %s346_s2 = inlined_call_operand.hbm [shape: f32[8,128], index: 2, kind: input, shape index: {}]   ;;  %s347_s3 = inlined_call_operand.hbm [shape: f32[8,128], index: 3, kind: input, shape index: {}]   ;;  %s348_s4 = inlined_call_operand.hbm [shape: f32[1,2], index: 4, kind: output, shape index: {0}]   ;;  %s349_s5 = inlined_call_operand.hbm [shape: f32[8,128], index: 5, kind: output, shape index: {1}]  }
   0x1   :  { %12 = vsyncpa [#allocation4], 0 }
   0x2   :  { %13 = vsyncpa [#allocation10], 0 }
   0x3   :  { %14 = vsyncpa [#allocation7], 0 }
   0x4   :  { %15 = vsyncpa [#allocation5], 0  ;;  %s290_s18 = smov [#allocation9]   ;;  %s291_s20 = smov [#allocation8]  }
   0x5   :  { %s40_s19 = sshll.u32 %s290_s18, 4  ;;  %s30_s21 = sshll.u32 %s291_s20, 4  ;;  %s41_s19 = int_to_ptr.vmem [resolvable:$true] %s40_s19  ;;  %s31_s21 = int_to_ptr.vmem [resolvable:$true] %s30_s21 }
   0x6   :  { %s192_s22 = scalar_lea.vmem %s41_s19, 128  ;;  %p197_p1 = scmp.lt.s32.totalorder %s41_s19, %s41_s19 }
   0x7   :  { %p193_p0 = scmp.ne.s32.totalorder %s41_s19, %s192_s22  ;;  %p198_p2 = scmp.lt.s32.totalorder %s192_s22, %s192_s22 }
   0x9   :  { %p199_p3 = por %p198_p2, %p197_p1 }
   0xb   :  { %p200_p4 = pnand %p199_p3, %p193_p0 }
   0xd   :  { %203 = shalt.err (!%p200_p4)
}
   0xe   :  { %43 = dma.hbm_to_vmem [thread:$0]  %s346_s2, 128, %s41_s19, [#allocation10]  }
   0xf   :  { %s292_s25 = smov [#allocation3]   ;;  %s220_s28 = scalar_lea.vmem %s31_s21, 128 }
  0x10   :  { %23 = dma.hbm_to_smem %s344_s0, 16, %s292_s25, [#allocation6]  }
  0x11   :  { %p221_p5 = scmp.ne.s32.totalorder %s31_s21, %s220_s28  ;;  %p225_p6 = scmp.lt.s32.totalorder %s31_s21, %s31_s21 }
  0x12   :  { %p226_p7 = scmp.lt.s32.totalorder %s220_s28, %s220_s28 }
  0x14   :  { %p227_p8 = por %p226_p7, %p225_p6 }
  0x16   :  { %p228_p9 = pnand %p227_p8, %p221_p5 }
  0x18   :  { %231 = shalt.err (!%p228_p9)
}
  0x19   :  { %33 = dma.hbm_to_vmem [thread:$0]  %s345_s1, 128, %s31_s21, [#allocation4]  }
  0x1a   :  { %s293_s6 = smov [#allocation11]  }
  0x1b   :  { %s50_s7 = sshll.u32 %s293_s6, 4  ;;  %s51_s7 = int_to_ptr.vmem [resolvable:$true] %s50_s7 }
  0x1c   :  { %s240_s2 = scalar_lea.vmem %s51_s7, 128  ;;  %p245_p11 = scmp.lt.s32.totalorder %s51_s7, %s51_s7 }
  0x1d   :  { %p241_p10 = scmp.ne.s32.totalorder %s51_s7, %s240_s2  ;;  %p246_p12 = scmp.lt.s32.totalorder %s240_s2, %s240_s2 }
  0x1f   :  { %p247_p13 = por %p246_p12, %p245_p11 }
  0x21   :  { %p248_p0 = pnand %p247_p13, %p241_p10 }
  0x23   :  { %251 = shalt.err (!%p248_p0)
}
  0x24   :  { %53 = dma.hbm_to_vmem [thread:$0]  %s347_s3, 128, %s51_s7, [#allocation10]  }
  0x25   :  { %280 = dma.done.wait [#allocation6], 16  }
  0x26   :  { %281 = vsyncadd [#allocation6], 4294967280 }
  0x27   :  { %282 = dma.done.wait [#allocation4], 128  }
  0x28   :  { %283 = vsyncadd [#allocation4], 4294967168 }
  0x29   :  { %284 = dma.done.wait [#allocation10], 256  }
  0x2a   :  { %285 = vsyncadd [#allocation10], 4294967040 }
  0x2b   :  { %66 = sfence }
  0x2c   :  { %s164_s1 = sld [smem:[#allocation3 + $0x1]]  ;;  %v73_v0 = vld [vmem:[#allocation11] sm:$0xff]  ;;  %v94_v1 = vld [vmem:[#allocation8] sm:$0xff]  ;;  %v95_v16 = vld [vmem:[#allocation9] sm:$0xff]  ;;  %s294_s3 = smov [#allocation13]  }
  0x2d   :  { %v74_v2 = vand.u32 2147483647, %v73_v0  ;;  %v76_v3 = vmul.f32 4.5, %v73_v0  ;;  %v96_v4 = vsub.f32 0.0, %v94_v1  ;;  %v110_v21 = vsub.f32 1.0, %v95_v16  ;;  %s148_s9 = sshll.u32 %s294_s3, 4  ;;  %s149_s9 = int_to_ptr.vmem [resolvable:$true] %s148_s9 }
  0x2e   :  { %s252_s10 = scalar_lea.vmem %s149_s9, 128  ;;  %p257_p2 = scmp.lt.s32.totalorder %s149_s9, %s149_s9 }
  0x2f   :  { %vm75_vm0 = vcmp.lt.f32.partialorder %v74_v2, 0.11111111  ;;  %v77_v5 = vmul.f32 %v76_v3, %v73_v0  ;;  %v165_v6 = vadd.f32 -0.055555556, %v74_v2  ;;  %v97_v7 = vmul.f32 1.442695, %v96_v4  ;;  %p253_p1 = scmp.ne.s32.totalorder %s149_s9, %s252_s10  ;;  %p258_p3 = scmp.lt.s32.totalorder %s252_s10, %s252_s10 }
  0x31   :  { %v79_v8 = vsel %vm75_vm0, %v77_v5, %v165_v6  ;;  %176 = vpow2.f32 %v97_v7  ;;  %p259_p4 = por %p258_p3, %p257_p2 }
  0x32   :  { %v80_v9 = vstv %s164_s1 }
  0x33   :  { %v81_v10 = vmul.f32 %v80_v9, %v79_v8  ;;  %p260_p5 = pnand %p259_p4, %p253_p1 }
  0x35   :  { %83 = vadd.xlane.f32.xlu0 %v81_v10  ;;  %82 = vst [vmem:[#allocation13] sm:$0xff] %v81_v10 }
  0x3e   :  { %v177_v11 = vpop.eup %176 }
  0x3f   :  { %v99_v12 = vadd.f32 1.0, %v177_v11 }
  0x41   :  { %178 = vrcp.f32 %v99_v12 }
  0x4e   :  { %v179_v13 = vpop.eup %178 }
  0x4f   :  { %180 = vlog2.f32 %v179_v13  ;;  %v105_v14 = vsub.f32 1.0, %v179_v13 }
  0x51   :  { %182 = vlog2.f32 %v105_v14 }
  0x5c   :  { %v181_v15 = vpop.eup %180 }
  0x5d   :  { %v103_v17 = vmul.f32 0.6931472, %v181_v15 }
  0x5e   :  { %v183_v18 = vpop.eup %182 }
  0x5f   :  { %v104_v19 = vmax.f32 %v103_v17, -100.0  ;;  %v107_v20 = vmul.f32 0.6931472, %v183_v18 }
  0x61   :  { %v108_v22 = vmax.f32 %v107_v20, -100.0  ;;  %v109_v23 = vmul.f32 %v104_v19, %v95_v16 }
  0x63   :  { %v111_v24 = vmul.f32 %v110_v21, %v108_v22 }
  0x65   :  { %v112_v25 = vadd.f32 %v111_v24, %v109_v23 }
  0x67   :  { %v113_v26 = vsub.f32 0.0, %v112_v25 }
  0x69   :  { %121 = vadd.xlane.f32.xlu0 %v113_v26 }
  0x6a   :  { %263 = shalt.err (!%p260_p5)
}
  0x6b   :  { %151 = dma.vmem_to_hbm [thread:$0]  %s149_s9, 128, %s349_s5, [#allocation5]  }
  0x6c   :  { %s130_s14 = sld [smem:[#allocation3]]  ;;  %s295_s16 = smov [#allocation12]  }
  0xbe   :  { %v84_v27 = vpop.xlane.xlu0 %83 }
  0xbf   :  { %v85_v28 = vrot.slane %v84_v27, 4 }
  0xc1   :  { %v86_v29 = vadd.f32 %v85_v28, %v84_v27 }
  0xc3   :  { %v87_v30 = vrot.slane %v86_v29, 2 }
  0xc5   :  { %v88_v31 = vadd.f32 %v87_v30, %v86_v29 }
  0xc7   :  { %v89_v32 = vrot.slane %v88_v31, 1 }
  0xc9   :  { %v90_v33 = vadd.f32 %v89_v32, %v88_v31 }
  0xcb   :  { %166 = vpush %v90_v33 }
  0xf2   :  { %v122_v34 = vpop.xlane.xlu0 %121 }
  0xf3   :  { %v123_v35 = vrot.slane %v122_v34, 4 }
  0xf5   :  { %v124_v36 = vadd.f32 %v123_v35, %v122_v34 }
  0xf7   :  { %v125_v37 = vrot.slane %v124_v36, 2 }
  0xf9   :  { %v126_v38 = vadd.f32 %v125_v37, %v124_v36 }
  0xfb   :  { %v127_v39 = vrot.slane %v126_v38, 1 }
  0xfc   :  { %s167_s13 = spop %166 }
  0xfd   :  { %v128_v40 = vadd.f32 %v127_v39, %v126_v38  ;;  %93 = sst [smem:[#allocation12 + $0x1]] %s167_s13 }
  0xff   :  { %168 = vpush %v128_v40 }
 0x130   :  { %s169_s5 = spop %168 }
 0x131   :  { %s131_s15 = smul.f32 %s169_s5, %s130_s14 }
 0x133   :  { %133 = sst [smem:[#allocation12]] %s131_s15 }
 0x134   :  { %141 = dma.smem_to_hbm %s295_s16, 16, %s348_s4, [#allocation7]  }
 0x135   :  { %286 = dma.done.wait [#allocation7], 16  }
 0x136   :  { %287 = vsyncadd [#allocation7], 4294967280 }
 0x137   :  { %288 = dma.done.wait [#allocation5], 128  }
 0x138   :  { %289 = vsyncadd [#allocation5], 4294967168 }
 0x139   :  { %158 = sfence }
 0x13a   :  { %159 = vsyncpa [#allocation4], 1 }
 0x13b   :  { %160 = vsyncpa [#allocation10], 1 }
 0x13c   :  { %161 = vsyncpa [#allocation5], 1 }
 0x13d   :  { %162 = vsyncpa [#allocation6], 1 }
 0x13e   :  { %163 = vsyncpa [#allocation7], 1 }

</bundles_post_ra>
